<compile_context>
chip_gen: v5e
topology: v5e:2x2
jax: 0.10.0
libtpu: 0.0.40
codegen_flags: <defaults>
</compile_context>

<pallas_src>
import functools

import jax
import jax.numpy as jnp
from jax import lax
from jax.experimental import pallas as pl
from jax.experimental.pallas import tpu as pltpu


def _round_up(x, m):
    return (x + m - 1) // m * m


def _gmf_kernel(hidx_ref, vidx_ref,            # scalar-prefetch (SMEM) indices, (B_pad,)
                hf_ref, vft_ref,               # VMEM tiles: (TB, D) and (D, TB)
                human_hbm, virus_hbm,          # embedding tables, left in HBM (pl.ANY)
                out_ref,                       # (1, TB) lane-dense output tile
                u_buf, v_buf, c_acc, gsem,     # scratch
                *, tile_b):
    phase = pl.program_id(0)
    t = pl.program_id(1)
    f32 = jnp.float32

    @pl.when(jnp.logical_and(phase == 0, t == 0))
    def _init():
        c_acc[...] = jnp.zeros_like(c_acc)

    # ---------------- phase 0: gather rows + accumulate c[d] = sum_b a[b] V[b,d]
    @pl.when(phase == 0)
    def _phase0():
        base = t * tile_b

        # Row gathers from HBM driven by SMEM indices: issue all, then drain all
        # (all TB row fetches in flight; two semaphores, one per table).
        @pl.loop(0, tile_b)
        def _issue(i):
            hrow = hidx_ref[base + i]
            vrow = vidx_ref[base + i]
            pltpu.make_async_copy(human_hbm.at[pl.ds(hrow, 1), :],
                                  u_buf.at[pl.ds(i, 1), :], gsem.at[0]).start()
            pltpu.make_async_copy(virus_hbm.at[pl.ds(vrow, 1), :],
                                  v_buf.at[pl.ds(i, 1), :], gsem.at[1]).start()

        @pl.loop(0, tile_b)
        def _drain(i):
            pltpu.make_async_copy(human_hbm.at[pl.ds(0, 1), :],
                                  u_buf.at[pl.ds(i, 1), :], gsem.at[0]).wait()
            pltpu.make_async_copy(virus_hbm.at[pl.ds(0, 1), :],
                                  v_buf.at[pl.ds(i, 1), :], gsem.at[1]).wait()

        U = u_buf[...].astype(f32)                           # (TB, D)
        V = v_buf[...].astype(f32)                           # (TB, D)
        hf = hf_ref[...].astype(f32)                         # (TB, D)

        a = jnp.sum(U * hf, axis=1, keepdims=True)           # (TB, 1) lane reduce
        aV = a * V                                           # (TB, D)
        if tile_b >= 128:
            # Batch contraction on the MXU (worth it once TB fills the array).
            partial = jnp.dot(jnp.ones((1, tile_b), f32), aV,
                              preferred_element_type=f32)    # (1, D)
        else:
            # Tiny tile: sublane reduce on the XLU, skip MXU push/pop latency.
            partial = jnp.sum(aV, axis=0, keepdims=True)     # (1, D)
        c_acc[...] += partial

    # ---------------- phase 1: r[b] = sum_d c[d] * vf[b, d]
    @pl.when(phase == 1)
    def _phase1():
        c = c_acc[...]                                       # (1, D) f32
        vfT = vft_ref[...].astype(f32)                       # (D, TB), pre-transposed
        # (1,D)@(D,TB): natural MXU layout, no in-kernel transpose, lane-dense out.
        out_ref[...] = jnp.dot(c, vfT, preferred_element_type=f32)


def gmf_forward(h_idxs, v_idxs, h_feats, v_feats, human_emb, virus_emb):
    """Equivalent of GMF.forward; returns xUVy with shape (B,)."""
    assert h_idxs.shape == v_idxs.shape
    B, D = h_feats.shape
    NH = human_emb.shape[0]
    NV = virus_emb.shape[0]

    # Batch tile: 128 lanes at production batch, else the smallest 8-multiple
    # covering B (then the single block spans the full padded array, satisfying
    # the (8,128)-or-full-dim tiling rule on every generation).
    TB = 128 if B >= 128 else _round_up(B, 8)
    B_pad = _round_up(B, TB)
    num_tiles = B_pad // TB
    pad = B_pad - B

    # Indices -> int32, clamped (torch would raise on OOB), padded with row 0.
    hidx = jnp.pad(jnp.clip(h_idxs.astype(jnp.int32), 0, NH - 1), (0, pad))
    vidx = jnp.pad(jnp.clip(v_idxs.astype(jnp.int32), 0, NV - 1), (0, pad))

    # Zero-padded rows => a[b]=0 for padding, so padded rows never pollute c.
    hf = jnp.pad(h_feats, ((0, pad), (0, 0)))
    # Wrapper-side transpose = layout plumbing so the kernel never transposes.
    vfT = jnp.pad(v_feats, ((0, pad), (0, 0))).T             # (D, B_pad)

    kernel = functools.partial(_gmf_kernel, tile_b=TB)

    grid_spec = pltpu.PrefetchScalarGridSpec(
        num_scalar_prefetch=2,
        grid=(2, num_tiles),                                 # (phase, batch tile)
        in_specs=[
            # h_feats: only needed in phase 0; pin to last tile during phase 1.
            pl.BlockSpec((TB, D),
                         lambda p, t, *_: (jnp.where(p == 0, t, num_tiles - 1), 0)),
            # v_feats^T: only needed in phase 1; pin to tile 0 during phase 0.
            pl.BlockSpec((D, TB),
                         lambda p, t, *_: (0, jnp.where(p == 0, 0, t))),
            # Embedding tables stay in HBM; gathered row-by-row in-kernel.
            pl.BlockSpec(memory_space=pl.ANY),
            pl.BlockSpec(memory_space=pl.ANY),
        ],
        out_specs=pl.BlockSpec((1, TB),
                               lambda p, t, *_: (0, jnp.where(p == 0, 0, t))),
        scratch_shapes=[
            pltpu.VMEM((TB, D), human_emb.dtype),            # gathered U rows
            pltpu.VMEM((TB, D), virus_emb.dtype),            # gathered V rows
            pltpu.VMEM((1, D), jnp.float32),                 # c accumulator
            pltpu.SemaphoreType.DMA((2,)),                   # one sem per table
        ],
    )

    # Advisory cost: only B gathered rows (not full tables), actual op mix.
    bytes_accessed = (
        B_pad * D * human_emb.dtype.itemsize
        + B_pad * D * virus_emb.dtype.itemsize
        + B_pad * D * h_feats.dtype.itemsize
        + B_pad * D * v_feats.dtype.itemsize
        + 2 * B_pad * 4                                      # indices
        + B_pad * 4)                                         # output
    flops = 8 * B_pad * D

    out = pl.pallas_call(
        kernel,
        out_shape=jax.ShapeDtypeStruct((1, B_pad), jnp.float32),
        grid_spec=grid_spec,
        compiler_params=pltpu.CompilerParams(
            dimension_semantics=("arbitrary", "arbitrary"),
            vmem_limit_bytes=32 * 1024 * 1024),
        cost_estimate=pl.CostEstimate(flops=flops, transcendentals=0,
                                      bytes_accessed=bytes_accessed),
    )(hidx, vidx, hf, vfT, human_emb, virus_emb)

    return out[0, :B]                                        # (B,) like torch


def gmf_reference(h_idxs, v_idxs, h_feats, v_feats, human_emb, virus_emb):
    # Pure-JAX reference of the exact torch broadcast/reduce chain (f32).
    U = human_emb[h_idxs]
    V = virus_emb[v_idxs]
    a = (U * h_feats).sum(1)                                 # (B,)
    c = (a[None, :] * V.T).sum(1)                            # (D,)
    return (c[None, :] * v_feats).sum(1)                     # (B,)


def xavier_normal(key, shape, dtype=jnp.float32):
    # nn.init.xavier_normal_ on a 2-D (fan_out, fan_in) weight
    fan_out, fan_in = shape
    std = (2.0 / (fan_in + fan_out)) ** 0.5
    return std * jax.random.normal(key, shape, dtype=dtype)


def _run_case(key, num_human, num_virus, latent_dim, batch):
    k1, k2, k3, k4, k5, k6 = jax.random.split(key, 6)
    human_emb = xavier_normal(k1, (num_human, latent_dim))
    virus_emb = xavier_normal(k2, (num_virus, latent_dim))
    h_idxs = jax.random.randint(k3, (batch,), 0, num_human, dtype=jnp.int32)
    v_idxs = jax.random.randint(k4, (batch,), 0, num_virus, dtype=jnp.int32)
    h_feats = jax.random.normal(k5, (batch, latent_dim), dtype=jnp.float32)
    v_feats = jax.random.normal(k6, (batch, latent_dim), dtype=jnp.float32)

    out = gmf_forward(h_idxs, v_idxs, h_feats, v_feats, human_emb, virus_emb)
    out = jax.block_until_ready(out)
    ref = gmf_reference(h_idxs, v_idxs, h_feats, v_feats, human_emb, virus_emb)

    assert out.shape == (batch,)
    assert jnp.allclose(out, ref, rtol=1e-3, atol=1e-3), \
        float(jnp.max(jnp.abs(out - ref)))


if __name__ == "__main__":
    key = jax.random.PRNGKey(0)
    k_small, k_big = jax.random.split(key, 2)

    # Small case from the original spec (single tile, VPU/XLU path).
    _run_case(k_small, num_human=12, num_virus=10, latent_dim=32, batch=8)

    # Larger case exercising the tiled two-phase path: TB=128, 2 batch tiles,
    # padding, lane-dense 128-wide output stores, MXU batch contraction.
    _run_case(k_big, num_human=300, num_virus=257, latent_dim=64, batch=160)

    print("KERNEL_OK")
</pallas_src>

<mosaic_0001>
module attributes {stable_mosaic.version = 11 : i64} {
  func.func @_gmf_kernel(%arg0: i32, %arg1: i32, %arg2: memref<8xi32, #tpu.memory_space<smem>>, %arg3: memref<8xi32, #tpu.memory_space<smem>>, %arg4: memref<8x32xf32, #tpu.memory_space<vmem>>, %arg5: memref<32x8xf32, #tpu.memory_space<vmem>>, %arg6: memref<12x32xf32, #tpu.memory_space<any>>, %arg7: memref<10x32xf32, #tpu.memory_space<any>>, %arg8: memref<1x8xf32, #tpu.memory_space<vmem>>, %arg9: memref<8x32xf32, #tpu.memory_space<vmem>>, %arg10: memref<8x32xf32, #tpu.memory_space<vmem>>, %arg11: memref<1x32xf32, #tpu.memory_space<vmem>>, %arg12: memref<2x!tpu.dma_semaphore, #tpu.memory_space<semaphore_mem>>) attributes {dimension_semantics = [#tpu.dimension_semantics<arbitrary>, #tpu.dimension_semantics<arbitrary>], iteration_bounds = array<i64: 2, 1>, scalar_prefetch = 2 : i64, scratch_operands = 4 : i64, tpu.core_type = #tpu.core_type<tc>, window_params = [{transform_indices = @transform_0, window_bounds = array<i64: 8, 32>}, {transform_indices = @transform_1, window_bounds = array<i64: 32, 8>}, {}, {}, {transform_indices = @transform_4, window_bounds = array<i64: 1, 8>}]} {
    %c0_i32 = arith.constant 0 : i32
    %0 = arith.cmpi eq, %arg0, %c0_i32 : i32
    %c0_i32_0 = arith.constant 0 : i32
    %1 = arith.cmpi eq, %arg1, %c0_i32_0 : i32
    %2 = arith.andi %0, %1 : i1
    %3 = arith.extui %2 : i1 to i32
    %c0_i32_1 = arith.constant 0 : i32
    %4 = arith.cmpi ne, %3, %c0_i32_1 : i32
    scf.if %4 {
      %cst = arith.constant 0.000000e+00 : f32
      %11 = vector.broadcast %cst : f32 to vector<1x32xf32>
      %c0 = arith.constant 0 : index
      %c0_5 = arith.constant 0 : index
      %12 = vector.load %arg11[%c0, %c0_5] : memref<1x32xf32, #tpu.memory_space<vmem>>, vector<1x32xf32>
      tpu.vector_store %arg11[%c0, %c0_5], %11 {strides = array<i32>} : memref<1x32xf32, #tpu.memory_space<vmem>>, vector<1x32xf32>,
    } else {
    }
    %c0_i32_2 = arith.constant 0 : i32
    %5 = arith.cmpi eq, %arg0, %c0_i32_2 : i32
    %6 = arith.extui %5 : i1 to i32
    %c0_i32_3 = arith.constant 0 : i32
    %7 = arith.cmpi ne, %6, %c0_i32_3 : i32
    scf.if %7 {
      %c8_i32 = arith.constant 8 : i32
      %11 = arith.muli %arg1, %c8_i32 : i32
      %c0_i32_5 = arith.constant 0 : i32
      %c8_i32_6 = arith.constant 8 : i32
      %12 = arith.addi %c0_i32_5, %c8_i32_6 : i32
      %c1_i32_7 = arith.constant 1 : i32
      scf.for %arg13 = %c0_i32_5 to %12 step %c1_i32_7  : i32 {
        %c1_i32_23 = arith.constant 1 : i32
        %27 = arith.muli %arg13, %c1_i32_23 : i32
        %c0_i32_24 = arith.constant 0 : i32
        %28 = arith.addi %c0_i32_24, %27 : i32
        %29 = arith.addi %11, %28 : i32
        %30 = arith.index_cast %29 : i32 to index
        %31 = memref.load %arg2[%30] : memref<8xi32, #tpu.memory_space<smem>>
        %32 = arith.addi %11, %28 : i32
        %33 = arith.index_cast %32 : i32 to index
        %34 = memref.load %arg3[%33] : memref<8xi32, #tpu.memory_space<smem>>
        %c0_i32_25 = arith.constant 0 : i32
        %c0_i32_26 = arith.constant 0 : i32
        %35 = tpu.memref_slice %arg6[%31, %c0_i32_26] : memref<12x32xf32, #tpu.memory_space<any>> -> memref<1x32xf32, #tpu.memory_space<any>>
        %c0_i32_27 = arith.constant 0 : i32
        %36 = tpu.memref_slice %arg9[%28, %c0_i32_27] : memref<8x32xf32, #tpu.memory_space<vmem>> -> memref<1x32xf32, #tpu.memory_space<vmem>>
        %37 = tpu.memref_slice %arg12[%c0_i32_25] : memref<2x!tpu.dma_semaphore, #tpu.memory_space<semaphore_mem>> -> memref<1x!tpu.dma_semaphore, #tpu.memory_space<semaphore_mem>>
        %38 = tpu.memref_squeeze %37 : memref<1x!tpu.dma_semaphore, #tpu.memory_space<semaphore_mem>> -> memref<!tpu.dma_semaphore, #tpu.memory_space<semaphore_mem>>
        tpu.enqueue_dma source(%35 : memref<1x32xf32, #tpu.memory_space<any>>) target(%36 : memref<1x32xf32, #tpu.memory_space<vmem>>) target_semaphore(%38 : memref<!tpu.dma_semaphore, #tpu.memory_space<semaphore_mem>>)
        %c1_i32_28 = arith.constant 1 : i32
        %c0_i32_29 = arith.constant 0 : i32
        %39 = tpu.memref_slice %arg7[%34, %c0_i32_29] : memref<10x32xf32, #tpu.memory_space<any>> -> memref<1x32xf32, #tpu.memory_space<any>>
        %c0_i32_30 = arith.constant 0 : i32
        %40 = tpu.memref_slice %arg10[%28, %c0_i32_30] : memref<8x32xf32, #tpu.memory_space<vmem>> -> memref<1x32xf32, #tpu.memory_space<vmem>>
        %41 = tpu.memref_slice %arg12[%c1_i32_28] : memref<2x!tpu.dma_semaphore, #tpu.memory_space<semaphore_mem>> -> memref<1x!tpu.dma_semaphore, #tpu.memory_space<semaphore_mem>>
        %42 = tpu.memref_squeeze %41 : memref<1x!tpu.dma_semaphore, #tpu.memory_space<semaphore_mem>> -> memref<!tpu.dma_semaphore, #tpu.memory_space<semaphore_mem>>
        tpu.enqueue_dma source(%39 : memref<1x32xf32, #tpu.memory_space<any>>) target(%40 : memref<1x32xf32, #tpu.memory_space<vmem>>) target_semaphore(%42 : memref<!tpu.dma_semaphore, #tpu.memory_space<semaphore_mem>>)
      }
      %c8_i32_8 = arith.constant 8 : i32
      %c0_i32_9 = arith.constant 0 : i32
      %c8_i32_10 = arith.constant 8 : i32
      %13 = arith.addi %c0_i32_9, %c8_i32_10 : i32
      %c1_i32_11 = arith.constant 1 : i32
      scf.for %arg13 = %c0_i32_9 to %13 step %c1_i32_11  : i32 {
        %c1_i32_23 = arith.constant 1 : i32
        %27 = arith.muli %arg13, %c1_i32_23 : i32
        %c0_i32_24 = arith.constant 0 : i32
        %28 = arith.addi %c0_i32_24, %27 : i32
        %c0_i32_25 = arith.constant 0 : i32
        %c0_i32_26 = arith.constant 0 : i32
        %c0_i32_27 = arith.constant 0 : i32
        %29 = tpu.memref_slice %arg6[%c0_i32_26, %c0_i32_27] : memref<12x32xf32, #tpu.memory_space<any>> -> memref<1x32xf32, #tpu.memory_space<any>>
        %c0_i32_28 = arith.constant 0 : i32
        %30 = tpu.memref_slice %arg9[%28, %c0_i32_28] : memref<8x32xf32, #tpu.memory_space<vmem>> -> memref<1x32xf32, #tpu.memory_space<vmem>>
        %31 = tpu.memref_slice %arg12[%c0_i32_25] : memref<2x!tpu.dma_semaphore, #tpu.memory_space<semaphore_mem>> -> memref<1x!tpu.dma_semaphore, #tpu.memory_space<semaphore_mem>>
        %32 = tpu.memref_squeeze %31 : memref<1x!tpu.dma_semaphore, #tpu.memory_space<semaphore_mem>> -> memref<!tpu.dma_semaphore, #tpu.memory_space<semaphore_mem>>
        tpu.wait_dma2 semaphore(%32 : memref<!tpu.dma_semaphore, #tpu.memory_space<semaphore_mem>>) src(%29 : memref<1x32xf32, #tpu.memory_space<any>>) dst(%30 : memref<1x32xf32, #tpu.memory_space<vmem>>)
        %c1_i32_29 = arith.constant 1 : i32
        %c0_i32_30 = arith.constant 0 : i32
        %c0_i32_31 = arith.constant 0 : i32
        %33 = tpu.memref_slice %arg7[%c0_i32_30, %c0_i32_31] : memref<10x32xf32, #tpu.memory_space<any>> -> memref<1x32xf32, #tpu.memory_space<any>>
        %c0_i32_32 = arith.constant 0 : i32
        %34 = tpu.memref_slice %arg10[%28, %c0_i32_32] : memref<8x32xf32, #tpu.memory_space<vmem>> -> memref<1x32xf32, #tpu.memory_space<vmem>>
        %35 = tpu.memref_slice %arg12[%c1_i32_29] : memref<2x!tpu.dma_semaphore, #tpu.memory_space<semaphore_mem>> -> memref<1x!tpu.dma_semaphore, #tpu.memory_space<semaphore_mem>>
        %36 = tpu.memref_squeeze %35 : memref<1x!tpu.dma_semaphore, #tpu.memory_space<semaphore_mem>> -> memref<!tpu.dma_semaphore, #tpu.memory_space<semaphore_mem>>
        tpu.wait_dma2 semaphore(%36 : memref<!tpu.dma_semaphore, #tpu.memory_space<semaphore_mem>>) src(%33 : memref<1x32xf32, #tpu.memory_space<any>>) dst(%34 : memref<1x32xf32, #tpu.memory_space<vmem>>)
      }
      %c8_i32_12 = arith.constant 8 : i32
      %c0 = arith.constant 0 : index
      %c0_13 = arith.constant 0 : index
      %14 = vector.load %arg9[%c0, %c0_13] : memref<8x32xf32, #tpu.memory_space<vmem>>, vector<8x32xf32>
      %c0_14 = arith.constant 0 : index
      %c0_15 = arith.constant 0 : index
      %15 = vector.load %arg10[%c0_14, %c0_15] : memref<8x32xf32, #tpu.memory_space<vmem>>, vector<8x32xf32>
      %c0_16 = arith.constant 0 : index
      %c0_17 = arith.constant 0 : index
      %16 = vector.load %arg4[%c0_16, %c0_17] : memref<8x32xf32, #tpu.memory_space<vmem>>, vector<8x32xf32>
      %17 = arith.mulf %14, %16 : vector<8x32xf32>
      %cst = arith.constant dense<0.000000e+00> : vector<8xf32>
      %18 = vector.multi_reduction <add>, %17, %cst [1] : vector<8x32xf32> to vector<8xf32>
      %19 = vector.shape_cast %18 : vector<8xf32> to vector<8x1xf32>
      %20 = vector.broadcast %19 : vector<8x1xf32> to vector<8x32xf32>
      %21 = arith.mulf %20, %15 : vector<8x32xf32>
      %cst_18 = arith.constant dense<0.000000e+00> : vector<32xf32>
      %22 = vector.multi_reduction <add>, %21, %cst_18 [0] : vector<8x32xf32> to vector<32xf32>
      %23 = vector.shape_cast %22 : vector<32xf32> to vector<1x32xf32>
      %c0_19 = arith.constant 0 : index
      %c0_20 = arith.constant 0 : index
      %24 = vector.load %arg11[%c0_19, %c0_20] : memref<1x32xf32, #tpu.memory_space<vmem>>, vector<1x32xf32>
      %25 = arith.addf %24, %23 : vector<1x32xf32>
      %c0_21 = arith.constant 0 : index
      %c0_22 = arith.constant 0 : index
      %26 = vector.load %arg11[%c0_21, %c0_22] : memref<1x32xf32, #tpu.memory_space<vmem>>, vector<1x32xf32>
      tpu.vector_store %arg11[%c0_21, %c0_22], %25 {strides = array<i32>} : memref<1x32xf32, #tpu.memory_space<vmem>>, vector<1x32xf32>,
    } else {
    }
    %c1_i32 = arith.constant 1 : i32
    %8 = arith.cmpi eq, %arg0, %c1_i32 : i32
    %9 = arith.extui %8 : i1 to i32
    %c0_i32_4 = arith.constant 0 : i32
    %10 = arith.cmpi ne, %9, %c0_i32_4 : i32
    scf.if %10 {
      %c0 = arith.constant 0 : index
      %c0_5 = arith.constant 0 : index
      %11 = vector.load %arg11[%c0, %c0_5] : memref<1x32xf32, #tpu.memory_space<vmem>>, vector<1x32xf32>
      %c0_6 = arith.constant 0 : index
      %c0_7 = arith.constant 0 : index
      %12 = vector.load %arg5[%c0_6, %c0_7] : memref<32x8xf32, #tpu.memory_space<vmem>>, vector<32x8xf32>
      %cst = arith.constant dense<0.000000e+00> : vector<1x8xf32>
      %13 = tpu.matmul %11, %12, %cst {dimension_numbers = #tpu.dot_dimension_numbers<[1], [0], [0], [1], [0, 0, 1, 1], [], []>} : vector<1x32xf32>, vector<32x8xf32>, vector<1x8xf32> -> vector<1x8xf32>
      %c0_8 = arith.constant 0 : index
      %c0_9 = arith.constant 0 : index
      %14 = vector.load %arg8[%c0_8, %c0_9] : memref<1x8xf32, #tpu.memory_space<vmem>>, vector<1x8xf32>
      tpu.vector_store %arg8[%c0_8, %c0_9], %13 {strides = array<i32>} : memref<1x8xf32, #tpu.memory_space<vmem>>, vector<1x8xf32>,
    } else {
    }
    return
  }
  func.func @transform_0(%arg0: i32, %arg1: i32, %arg2: memref<8xi32, #tpu.memory_space<smem>>, %arg3: memref<8xi32, #tpu.memory_space<smem>>) -> (i32, i32) {
    %c0_i32 = arith.constant 0 : i32
    %0 = arith.cmpi eq, %arg0, %c0_i32 : i32
    %c0_i32_0 = arith.constant 0 : i32
    %1 = arith.select %0, %arg1, %c0_i32_0 : i32
    %c0_i32_1 = arith.constant 0 : i32
    %c0_i32_2 = arith.constant 0 : i32
    return %1, %c0_i32_1 : i32, i32
  }
  func.func @transform_1(%arg0: i32, %arg1: i32, %arg2: memref<8xi32, #tpu.memory_space<smem>>, %arg3: memref<8xi32, #tpu.memory_space<smem>>) -> (i32, i32) {
    %c0_i32 = arith.constant 0 : i32
    %0 = arith.cmpi eq, %arg0, %c0_i32 : i32
    %c0_i32_0 = arith.constant 0 : i32
    %1 = arith.select %0, %c0_i32_0, %arg1 : i32
    %c0_i32_1 = arith.constant 0 : i32
    %c0_i32_2 = arith.constant 0 : i32
    return %c0_i32_1, %1 : i32, i32
  }
  func.func @transform_4(%arg0: i32, %arg1: i32, %arg2: memref<8xi32, #tpu.memory_space<smem>>, %arg3: memref<8xi32, #tpu.memory_space<smem>>) -> (i32, i32) {
    %c0_i32 = arith.constant 0 : i32
    %0 = arith.cmpi eq, %arg0, %c0_i32 : i32
    %c0_i32_0 = arith.constant 0 : i32
    %1 = arith.select %0, %c0_i32_0, %arg1 : i32
    %c0_i32_1 = arith.constant 0 : i32
    %c0_i32_2 = arith.constant 0 : i32
    return %c0_i32_1, %1 : i32, i32
  }
}

</mosaic_0001>

<bundles_post_ra>
// kernel: tpu_custom_call.1
= control target key start
LH: loop header
LB: loop body
LE: loop exit
PB: predicated region body
PF: predicated region fallthrough
CT: control target
= control target key end

     0   :  { %s679_s27 = smov [#allocation7]   ;;  %s680_s28 = smov [#allocation8]   ;;  %s787_s0 = inlined_call_operand.hbm [shape: s32[8], index: 0, kind: input, shape index: {}]   ;;  %s788_s2 = inlined_call_operand.vmem [shape: f32[8,32], index: 2, kind: input, shape index: {}]   ;;  %s789_s3 = inlined_call_operand.vmem [shape: f32[32,8], index: 3, kind: input, shape index: {}]   ;;  %s790_s4 = inlined_call_operand.vmem [shape: f32[12,32], index: 4, kind: input, shape index: {}]   ;;  %s791_s5 = inlined_call_operand.vmem [shape: f32[10,32], index: 5, kind: input, shape index: {}]   ;;  %s792_s6 = inlined_call_operand.hbm [shape: f32[1,8], index: 6, kind: output, shape index: {}]   ;;  %s793_s1 = inlined_call_operand.hbm [shape: s32[8], index: 1, kind: input, shape index: {}]  }
   0x1   :  { %s12_s23 = sshll.u32 %s787_s0, 4  ;;  %s17_s26 = sshll.u32 %s793_s1, 4  ;;  %s13_s23 = int_to_ptr.hbm [resolvable:$true] %s12_s23  ;;  %s18_s26 = int_to_ptr.hbm [resolvable:$true] %s17_s26 }
   0x2   :  { %15 = dma.hbm_to_smem %s13_s23, 16, %s679_s27, [#allocation6] }
   0x3   :  { %20 = dma.hbm_to_smem %s18_s26, 16, %s680_s28, [#allocation6] }
   0x4   :  { %649 = dma.done.wait [#allocation6], 32 }
   0x5   :  { %650 = vsyncadd [#allocation6], 4294967264 }
   0x6   :  { %23 = sfence }
   0x7   :  { %24 = vsyncpa [#allocation10], 0 }
   0x8   :  { %26 = vsyncpa [#allocation10 + $0x1], 0  ;;  %s724_s29 = smov 0   ;;  %s726_s30 = smov 0  }
   0x9   :  { %s728_s0 = smov 0  }
   0xa LB: > { %s504_s1 = sadd.s32 4294967295, %s669_s0   ;;  %s505_s7 = sadd.s32 4294967294, %s669_s0   ;;  %s669_s0 = sphi %s728_s0, %s32_s0   ;;  %s665_s30 = sphi %s726_s30, %s795_s30   ;;  %s661_s29 = sphi %s724_s29, %s794_s29  }
   0xb   : > { %s44_s8 = sadd.s32 1, %s665_s30  ;;  %p510_p0 = scmp.ge.s32.totalorder %s669_s0, 1 }
   0xc   : > { %p46_p1 = scmp.ge.s32.totalorder %s44_s8, 2  ;;  %p172_p2 = scmp.lt.s32.totalorder %s669_s0, 3 }
   0xe   : > { %s797_s8 = smov (%p46_p1, %s44_s8), 0  ;;  %p173_p3 = pnand %p510_p0, %p172_p2 }
   0xf   : > { %p218_p4 = scmp.eq.s32.totalorder (!%p173_p3), %s661_s29, 0 }
  0x10   : > { %176 = sbr.rel (%p173_p3) target bundleno = 343 (0x157), region = 28 }
  0x15   : > { %223 = sbr.rel (!%p218_p4) target bundleno = 26 (0x1a), region = 32  ;;  %vm224_vm0 = vcmask (%p218_p4), 253952   ;;  %v681_v0 = vmov (%p218_p4), 0.0  }
  0x16   : > { %225 = vst.msk [vmem:[#allocation4] sm:$0x1] (%p218_p4), %vm224_vm0, %v681_v0 }
  0x1a PF: > { %p512_p5 = scmp.ne.s32.totalorder %s661_s29, 0 }
  0x1b   : > { %s671_s9 = smov (!%p512_p5), 0  }
  0x1c   : > { %228 = sbr.rel (%p512_p5) target bundleno = 197 (0xc5), region = 36 }
  0x21 LB: >> { %s237_s10 = sld [smem:[#allocation7 + %s673_s9]]  ;;  %s240_s15 = scalar_lea.vmem [#allocation2], %s673_s9  ;;  %s673_s9 = sphi %s671_s9, %s235_s9  }
  0x22   : >> { %s238_s11 = sld [smem:[#allocation8 + %s673_s9]] }
  0x27   : >> { %s239_s14 = scalar_lea.vmem %s790_s4, %s237_s10 }
  0x28   : >> { %v255_v1 = vld [vmem:[%s239_s14] sm:$0x1] }
  0x29   : >> { %256 = vst [vmem:[%s240_s15] sm:$0x1] %v255_v1 }
  0x2a   : >> { %274 = vsyncadd [#allocation5], 16  ;;  %s275_s18 = scalar_lea.vmem %s791_s5, %s238_s11  ;;  %s276_s19 = scalar_lea.vmem [#allocation3], %s673_s9 }
  0x2b   : >> { %v292_v2 = vld [vmem:[%s275_s18] sm:$0x1] }
  0x2c   : >> { %293 = vst [vmem:[%s276_s19] sm:$0x1] %v292_v2 }
  0x2d   : >> { %311 = vsyncadd [#allocation5 + $0x1], 16  ;;  %s235_s9 = sadd.s32 1, %s673_s9  }
  0x2e   : >> { %p232_p6 = scmp.ge.s32.totalorder %s235_s9, 8  }
  0x2f   : > { %s675_s20 = smov (%p232_p6), 0  }
  0x30   : > { %234 = sbr.rel (!%p232_p6) target bundleno = 33 (0x21), region = 167 }
  0x35 LB: >> { %651 = dma.done.wait [#allocation5], 16  ;;  %s677_s20 = sphi %s675_s20, %s317_s20  }
  0x36   : >> { %652 = vsyncadd [#allocation5], 4294967280 }
  0x37   : >> { %653 = dma.done.wait [#allocation5 + $0x1], 16 }
  0x38   : >> { %654 = vsyncadd [#allocation5 + $0x1], 4294967280  ;;  %s317_s20 = sadd.s32 1, %s677_s20  }
  0x39   : >> { %p314_p7 = scmp.ge.s32.totalorder %s317_s20, 8  }
  0x3a   : > { %v324_v3 = vld [vmem:[#allocation2] sm:$0xff] (%p314_p7)  ;;  %vm328_vm1 = vcmask (%p314_p7), 261120   ;;  %v325_v7 = vld [vmem:[#allocation3] sm:$0xff] (%p314_p7)  ;;  %v340_v16 = vld [vmem:[#allocation4] sm:$0x1] (%p314_p7)  ;;  %vm342_vm2 = vcmask (%p314_p7), 253952  }
  0x3b   : > { %316 = sbr.rel (!%p314_p7) target bundleno = 53 (0x35), region = 178  ;;  %v326_v4 = vld [vmem:[%s788_s2] sm:$0xff] (%p314_p7) }
  0x3c   : > { %v327_v5 = vmul.f32 (%p314_p7), %v326_v4, %v324_v3 }
  0x3e   : > { %v329_v6 = vsel (%p314_p7), %vm328_vm1, %v327_v5, 0.0 }
  0x3f   : > { %330 = vadd.xlane.f32.xlu0 (%p314_p7), %v329_v6 }
  0xb2   : > { %v331_v8 = vpop.xlane.xlu0 %330 }
  0xb3   : > { %v332_v9 = vmul.f32 %v331_v8, %v325_v7 }
  0xb5   : > { %v333_v10 = vsel %vm328_vm1, %v332_v9, 0.0 }
  0xb6   : > { %v334_v11 = vrot.slane %v333_v10, 4 }
  0xb8   : > { %v335_v12 = vadd.f32 %v334_v11, %v333_v10 }
  0xba   : > { %v336_v13 = vrot.slane %v335_v12, 2 }
  0xbc   : > { %v337_v14 = vadd.f32 %v336_v13, %v335_v12 }
  0xbe   : > { %v338_v15 = vrot.slane %v337_v14, 1 }
  0xc0   : > { %v339_v17 = vadd.f32 %v338_v15, %v337_v14 }
  0xc2   : > { %v341_v18 = vadd.f32 %v340_v16, %v339_v17 }
  0xc4   : > { %343 = vst.msk [vmem:[#allocation4] sm:$0x1] %vm342_vm2, %v341_v18 }
  0xc5 PF: > { %p513_p8 = scmp.ne.s32.totalorder %s661_s29, 1 }
  0xc7   : > { %347 = sbr.rel (%p513_p8) target bundleno = 339 (0x153), region = 114 }
  0xcc   : > { %v352_v19 = vld [vmem:[%s789_s3 + $0x18] sm:$0xff]  ;;  %v351_v20 = vld [vmem:[%s789_s3 + $0x10] sm:$0xff]  ;;  %v350_v21 = vld [vmem:[%s789_s3 + $0x8] sm:$0xff]  ;;  %vm353_vm3 = vcmask 261120   ;;  %vm377_vm4 = vcmask 57344  }
  0xcd   : > { %369 = vmatpush.msra.mxu0 %v352_v19  ;;  %v349_v22 = vld [vmem:[%s789_s3] sm:$0xff]  ;;  %v348_v23 = vld [vmem:[#allocation4] sm:$0x1] }
  0xcf   : > { %370 = vmatpush.msra.mxu0 %v351_v20 }
  0xd1   : > { %371 = vmatpush.msra.mxu0 %v350_v21 }
  0xd3   : > { %372 = vmatpush.msra.mxu0 %v349_v22 }
  0xd4   : > { %514 = vmatmul.msk.f32.vlgmr.msra.gmra.mxu0 %vm353_vm3, %v348_v23 }
 0x151   : > { %v374_v24 = vpop.f32.mrf.mxu0 }
 0x152   : > { %378 = vst.msk [vmem:[#allocation9] sm:$0x1] %vm377_vm4, %v374_v24 }
 0x153 PF: > { %p530_p9 = scmp.eq.s32.totalorder %s504_s1, 1  ;;  %s394_s12 = sshll.u32 %s792_s6, 4  ;;  %s395_s12 = int_to_ptr.hbm [resolvable:$true] %s394_s12 }
 0x154   : > { %s682_s13 = smov [#allocation9]  }
 0x155   : > { %s392_s14 = sshll.u32 %s682_s13, 4  ;;  %s393_s14 = int_to_ptr.vmem [resolvable:$true] %s392_s14 }
 0x156   : > { %523 = dma.vmem_to_hbm [thread:$0]  (%p530_p9), %s393_s14, 16, %s395_s12, [#allocation10]  }
 0x157 PF: > { %p531_p10 = scmp.ge.s32.totalorder %s669_s0, 2  ;;  %p532_p11 = scmp.eq.s32.totalorder %s505_s7, 1 }
 0x159   : > { %p527_p12 = pnand %p532_p11, %p531_p10 }
 0x15b   : > { %p528_p13 = pneg %p527_p12 }
 0x15d   : > { %656 = dma.done.wait (%p528_p13), [#allocation10], 16  }
 0x15e   : > { %658 = vsyncadd (%p528_p13), [#allocation10], 4294967280  ;;  %s32_s0 = sadd.s32 1, %s669_s0   ;;  %s794_s29 = smov %s665_s30 }
 0x15f   : > { %p29_p0 = scmp.ge.s32.totalorder %s32_s0, 4   ;;  %s795_s30 = smov %s797_s8 }
 0x161   :  { %31 = sbr.rel (!%p29_p0) target bundleno = 10 (0xa), region = 189 }
 0x166   :  { %412 = vsyncpa [#allocation10], 1 }
 0x167   :  { %414 = vsyncpa [#allocation10 + $0x1], 1 }
 0x168   :  { %415 = vsyncmov [#allocation5] }
 0x16b   :  { %s416_s1 = vpop.sfrf %415 }
 0x16c   :  { %p519_p1 = scmp.ne.s32.totalorder %s416_s1, 0 }
 0x16e   :  { %420 = shalt.err (%p519_p1)  }
 0x16f   :  { %422 = vsyncmov [#allocation5 + $0x1] }
 0x172   :  { %s423_s7 = vpop.sfrf %422 }
 0x173   :  { %p520_p2 = scmp.ne.s32.totalorder %s423_s7, 0 }
 0x175   :  { %427 = shalt.err (%p520_p2)  }

</bundles_post_ra>
